<compile_context>
chip_gen: v7x
topology: tpu7x:2x2x1
jax: 0.10.0
libtpu: 0.0.40
codegen_flags: <defaults>
</compile_context>

<pallas_src>
import functools

import jax
import jax.numpy as jnp
from jax.experimental import pallas as pl
from jax.experimental.pallas import tpu as pltpu


def _mha_kernel(x_ref, wqkv_ref, wo_ref, b_ref, o_ref, qkv_ref, cat_ref,
                *, block_b, seq, n_valid, heads, dim_head, inner):
    """One grid step = one batch tile (all heads)."""
    rows = block_b * seq

    # ---- Fused QKV projection: one wide MXU matmul (full output width). ----
    # f32 accumulation on the MXU, a single rounding to bf16 for the scratch.
    x = x_ref[...]                                                   # (rows, D) bf16
    qkv_ref[...] = jnp.dot(
        x, wqkv_ref[...], preferred_element_type=jnp.float32
    ).astype(jnp.bfloat16)

    needs_mask = (n_valid != seq)

    # ---- Per-head attention (statically unrolled; offsets are static). ----
    for h in range(heads):
        q = qkv_ref[:, pl.ds(h * dim_head, dim_head)]                # (rows, dh) bf16
        k = qkv_ref[:, pl.ds(inner + h * dim_head, dim_head)]        # (rows, dh) bf16
        v = qkv_ref[:, pl.ds(2 * inner + h * dim_head, dim_head)]    # (rows, dh) bf16

        q3 = q.reshape(block_b, seq, dim_head)
        k3 = k.reshape(block_b, seq, dim_head)
        v3 = v.reshape(block_b, seq, dim_head)

        # scale is already folded into the Q weight columns on the host.
        dots = jnp.einsum('bqd,bkd->bqk', q3, k3,
                          preferred_element_type=jnp.float32)        # (bb, Np, Np) f32
        if needs_mask:
            col = jax.lax.broadcasted_iota(jnp.int32, dots.shape, 2)
            dots = jnp.where(col < n_valid, dots, -1e30)             # mask padded keys

        m = jnp.max(dots, axis=-1, keepdims=True)
        p = jnp.exp(dots - m)                                        # unnormalized probs (f32)
        denom = jnp.sum(p, axis=-1, keepdims=True)                   # (bb, Np, 1) f32

        head_out = jnp.einsum('bqk,bkd->bqd', p.astype(jnp.bfloat16), v3,
                              preferred_element_type=jnp.float32)    # (bb, Np, dh) f32
        # Deferred softmax normalization on the small (Np, dh) result
        # (approx reciprocal -> EUP slot; fine for inference-style numerics).
        head_out = head_out * pl.reciprocal(denom, approx=True)

        cat_ref[:, pl.ds(h * dim_head, dim_head)] = (
            head_out.reshape(rows, dim_head).astype(jnp.bfloat16))

    # ---- Output projection: one full-K (rows, inner) @ (inner, D) matmul. ----
    out = jnp.dot(cat_ref[...], wo_ref[...], preferred_element_type=jnp.float32)
    o_ref[...] = (out + b_ref[...]).astype(o_ref.dtype)


def attention_pallas(x, w_qkv, w_out, b_out, *, heads, dim_head,
                     block_b=None, target_rows=512):
    B, N, D = x.shape
    inner = heads * dim_head
    assert w_qkv.shape == (D, 3 * inner)
    assert w_out.shape == (inner, D)
    scale = dim_head ** (-0.5)
    out_dtype = x.dtype

    # --- Pad sequence to a sublane multiple; padded keys masked in-kernel. ---
    n_pad = (-N) % 8
    Np = N + n_pad
    if n_pad:
        x = jnp.pad(x, ((0, 0), (0, n_pad), (0, 0)))

    # --- Batch elements per grid step: aim for ~target_rows rows, but keep
    #     at least 2 grid steps when possible so both TensorCores get work. ---
    if block_b is None:
        block_b = max(1, min(B, target_rows // max(Np, 1)))
        if B >= 2:
            block_b = max(1, min(block_b, B // 2))
    while B % block_b:
        block_b -= 1
    rows = block_b * Np   # always a multiple of 8 (Np is)

    # --- Host-side prep: fold softmax scale into Q columns (f32), cast bf16. ---
    w_prep = jnp.concatenate([w_qkv[:, :inner] * scale, w_qkv[:, inner:]],
                             axis=1).astype(jnp.bfloat16)            # (D, 3*inner)
    w_o = w_out.astype(jnp.bfloat16)                                 # (inner, D)
    b_o = b_out.reshape(1, D).astype(jnp.float32)
    x2 = x.reshape(B * Np, D).astype(jnp.bfloat16)

    kernel = functools.partial(_mha_kernel, block_b=block_b, seq=Np, n_valid=N,
                               heads=heads, dim_head=dim_head, inner=inner)

    out2 = pl.pallas_call(
        kernel,
        out_shape=jax.ShapeDtypeStruct((B * Np, D), jnp.float32),
        grid=(B // block_b,),
        in_specs=[
            pl.BlockSpec((rows, D), lambda b: (b, 0)),         # x rows (streamed)
            pl.BlockSpec((D, 3 * inner), lambda b: (0, 0)),    # fused QKV weight (resident)
            pl.BlockSpec((inner, D), lambda b: (0, 0)),        # output-proj weight (resident)
            pl.BlockSpec((1, D), lambda b: (0, 0)),            # bias (resident)
        ],
        out_specs=pl.BlockSpec((rows, D), lambda b: (b, 0)),
        scratch_shapes=[
            pltpu.VMEM((rows, 3 * inner), jnp.bfloat16),       # fused QKV activations
            pltpu.VMEM((rows, inner), jnp.bfloat16),           # per-head concat
        ],
        compiler_params=pltpu.CompilerParams(
            dimension_semantics=("parallel",),
            vmem_limit_bytes=48 * 1024 * 1024),
    )(x2, w_prep, w_o, b_o)

    out = out2.reshape(B, Np, D)
    if n_pad:
        out = out[:, :N, :]
    return out.astype(out_dtype)


def attention_ref(x, w_qkv, w_out, b_out, *, heads, dim_head):
    """Pure-JAX f32 reference (mirrors the PyTorch forward)."""
    B, N, D = x.shape
    scale = dim_head ** (-0.5)
    qkv = x @ w_qkv                                                  # (B, N, 3*inner)
    q, k, v = jnp.split(qkv, 3, axis=-1)

    def to_heads(t):                                                 # 'b n (h d) -> b h n d'
        return t.reshape(B, N, heads, dim_head).transpose(0, 2, 1, 3)

    q, k, v = map(to_heads, (q, k, v))
    dots = jnp.einsum('bhid,bhjd->bhij', q, k) * scale
    attn = jax.nn.softmax(dots, axis=-1)
    out = jnp.einsum('bhij,bhjd->bhid', attn, v)
    out = out.transpose(0, 2, 1, 3).reshape(B, N, heads * dim_head)  # 'b h n d -> b n (h d)'
    return out @ w_out + b_out


if __name__ == "__main__":
    # Small shapes consistent with the module's forward: x is (b, n, dim).
    B, N, DIM = 2, 8, 32
    HEADS, DIM_HEAD = 4, 16
    INNER = HEADS * DIM_HEAD

    key = jax.random.PRNGKey(0)
    k_x, k_wqkv, k_wout, k_bout, k_x2 = jax.random.split(key, 5)

    x = jax.random.normal(k_x, (B, N, DIM), dtype=jnp.float32)
    # to_qkv: nn.Linear(dim, inner*3, bias=False) -> stored as (dim, 3*inner)
    w_qkv = jax.random.normal(k_wqkv, (DIM, 3 * INNER), dtype=jnp.float32) * (DIM ** -0.5)
    # to_out[0]: nn.Linear(inner, dim) -> stored as (inner, dim), plus bias
    w_out = jax.random.normal(k_wout, (INNER, DIM), dtype=jnp.float32) * (INNER ** -0.5)
    b_out = jax.random.normal(k_bout, (1, DIM), dtype=jnp.float32) * 0.01

    out = attention_pallas(x, w_qkv, w_out, b_out, heads=HEADS, dim_head=DIM_HEAD)
    out = jax.block_until_ready(out)
    ref = attention_ref(x, w_qkv, w_out, b_out, heads=HEADS, dim_head=DIM_HEAD)
    assert out.shape == (B, N, DIM)
    # Tolerance accounts for deliberate bf16 MXU operands + approx reciprocal.
    assert jnp.allclose(out, ref, atol=7.5e-2, rtol=5e-2), "mismatch vs reference"

    # Second check: non-sublane-aligned sequence length exercises the
    # pad + masked-key path (N=10 pads to 16).
    N2 = 10
    x2 = jax.random.normal(k_x2, (B, N2, DIM), dtype=jnp.float32)
    out2 = attention_pallas(x2, w_qkv, w_out, b_out, heads=HEADS, dim_head=DIM_HEAD)
    out2 = jax.block_until_ready(out2)
    ref2 = attention_ref(x2, w_qkv, w_out, b_out, heads=HEADS, dim_head=DIM_HEAD)
    assert out2.shape == (B, N2, DIM)
    assert jnp.allclose(out2, ref2, atol=7.5e-2, rtol=5e-2), "mismatch vs reference (padded N)"

    print("KERNEL_OK")
</pallas_src>

<mosaic_0001>
module attributes {stable_mosaic.version = 11 : i64} {
  func.func @_mha_kernel(%arg0: i32, %arg1: memref<8x32xbf16, #tpu.memory_space<vmem>>, %arg2: memref<32x192xbf16, #tpu.memory_space<vmem>>, %arg3: memref<64x32xbf16, #tpu.memory_space<vmem>>, %arg4: memref<1x32xf32, #tpu.memory_space<vmem>>, %arg5: memref<8x32xf32, #tpu.memory_space<vmem>>, %arg6: memref<8x192xbf16, #tpu.memory_space<vmem>>, %arg7: memref<8x64xbf16, #tpu.memory_space<vmem>>) attributes {dimension_semantics = [#tpu.dimension_semantics<parallel>], iteration_bounds = array<i64: 2>, scalar_prefetch = 0 : i64, scratch_operands = 2 : i64, tpu.core_type = #tpu.core_type<tc>, window_params = [{transform_indices = @transform_0, window_bounds = array<i64: 8, 32>}, {pipeline_mode = #tpu.pipeline_mode<synchronous>, transform_indices = @transform_1, window_bounds = array<i64: 32, 192>}, {pipeline_mode = #tpu.pipeline_mode<synchronous>, transform_indices = @transform_2, window_bounds = array<i64: 64, 32>}, {pipeline_mode = #tpu.pipeline_mode<synchronous>, transform_indices = @transform_3, window_bounds = array<i64: 1, 32>}, {transform_indices = @transform_4, window_bounds = array<i64: 8, 32>}]} {
    %c0 = arith.constant 0 : index
    %c0_0 = arith.constant 0 : index
    %0 = vector.load %arg1[%c0, %c0_0] : memref<8x32xbf16, #tpu.memory_space<vmem>>, vector<8x32xbf16>
    %c0_1 = arith.constant 0 : index
    %c0_2 = arith.constant 0 : index
    %1 = vector.load %arg2[%c0_1, %c0_2] : memref<32x192xbf16, #tpu.memory_space<vmem>>, vector<32x192xbf16>
    %cst = arith.constant dense<0.000000e+00> : vector<8x192xf32>
    %2 = tpu.matmul %0, %1, %cst {dimension_numbers = #tpu.dot_dimension_numbers<[1], [0], [0], [1], [0, 0, 1, 1], [], []>} : vector<8x32xbf16>, vector<32x192xbf16>, vector<8x192xf32> -> vector<8x192xf32>
    %3 = arith.truncf %2 : vector<8x192xf32> to vector<8x192xbf16>
    %c0_3 = arith.constant 0 : index
    %c0_4 = arith.constant 0 : index
    %4 = vector.load %arg6[%c0_3, %c0_4] : memref<8x192xbf16, #tpu.memory_space<vmem>>, vector<8x192xbf16>
    tpu.vector_store %arg6[%c0_3, %c0_4], %3 {strides = array<i32>} : memref<8x192xbf16, #tpu.memory_space<vmem>>, vector<8x192xbf16>,
    %c0_5 = arith.constant 0 : index
    %c0_6 = arith.constant 0 : index
    %5 = vector.load %arg6[%c0_5, %c0_6] : memref<8x192xbf16, #tpu.memory_space<vmem>>, vector<8x16xbf16>
    %c0_7 = arith.constant 0 : index
    %c64 = arith.constant 64 : index
    %6 = vector.load %arg6[%c0_7, %c64] : memref<8x192xbf16, #tpu.memory_space<vmem>>, vector<8x16xbf16>
    %c0_8 = arith.constant 0 : index
    %c128 = arith.constant 128 : index
    %7 = vector.load %arg6[%c0_8, %c128] : memref<8x192xbf16, #tpu.memory_space<vmem>>, vector<8x16xbf16>
    %8 = vector.shape_cast %5 : vector<8x16xbf16> to vector<1x8x16xbf16>
    %9 = vector.shape_cast %6 : vector<8x16xbf16> to vector<1x8x16xbf16>
    %10 = vector.shape_cast %7 : vector<8x16xbf16> to vector<1x8x16xbf16>
    "tpu.trace_start"() <{level = 10 : i32, message = "bqd,bkd->bqk"}> : () -> ()
    %cst_9 = arith.constant dense<0.000000e+00> : vector<1x8x8xf32>
    %11 = tpu.matmul %8, %9, %cst_9 {dimension_numbers = #tpu.dot_dimension_numbers<[2], [2], [1], [1], [0, 0, 0, 1, 1, 1], [0], [0]>} : vector<1x8x16xbf16>, vector<1x8x16xbf16>, vector<1x8x8xf32> -> vector<1x8x8xf32>
    "tpu.trace_stop"() : () -> ()
    %cst_10 = arith.constant dense<0xFF800000> : vector<1x8xf32>
    %12 = vector.multi_reduction <maximumf>, %11, %cst_10 [2] : vector<1x8x8xf32> to vector<1x8xf32>
    %13 = vector.shape_cast %12 : vector<1x8xf32> to vector<1x8x1xf32>
    %14 = vector.broadcast %13 : vector<1x8x1xf32> to vector<1x8x8xf32>
    %15 = arith.subf %11, %14 : vector<1x8x8xf32>
    %16 = math.exp %15 : vector<1x8x8xf32>
    %cst_11 = arith.constant dense<0.000000e+00> : vector<1x8xf32>
    %17 = vector.multi_reduction <add>, %16, %cst_11 [2] : vector<1x8x8xf32> to vector<1x8xf32>
    %18 = vector.shape_cast %17 : vector<1x8xf32> to vector<1x8x1xf32>
    %19 = arith.truncf %16 : vector<1x8x8xf32> to vector<1x8x8xbf16>
    "tpu.trace_start"() <{level = 10 : i32, message = "bqk,bkd->bqd"}> : () -> ()
    %cst_12 = arith.constant dense<0.000000e+00> : vector<1x8x16xf32>
    %20 = tpu.matmul %19, %10, %cst_12 {dimension_numbers = #tpu.dot_dimension_numbers<[2], [1], [1], [2], [0, 0, 0, 1, 1, 2], [0], [0]>} : vector<1x8x8xbf16>, vector<1x8x16xbf16>, vector<1x8x16xf32> -> vector<1x8x16xf32>
    "tpu.trace_stop"() : () -> ()
    %21 = tpu.reciprocal %18 {approx = true} : vector<1x8x1xf32> -> vector<1x8x1xf32>
    %22 = vector.broadcast %21 : vector<1x8x1xf32> to vector<1x8x16xf32>
    %23 = arith.mulf %20, %22 : vector<1x8x16xf32>
    %24 = vector.shape_cast %23 : vector<1x8x16xf32> to vector<8x16xf32>
    %25 = arith.truncf %24 : vector<8x16xf32> to vector<8x16xbf16>
    %c0_13 = arith.constant 0 : index
    %c0_14 = arith.constant 0 : index
    %26 = vector.load %arg7[%c0_13, %c0_14] : memref<8x64xbf16, #tpu.memory_space<vmem>>, vector<8x16xbf16>
    tpu.vector_store %arg7[%c0_13, %c0_14], %25 {strides = array<i32>} : memref<8x64xbf16, #tpu.memory_space<vmem>>, vector<8x16xbf16>,
    %c0_15 = arith.constant 0 : index
    %c16 = arith.constant 16 : index
    %27 = vector.load %arg6[%c0_15, %c16] : memref<8x192xbf16, #tpu.memory_space<vmem>>, vector<8x16xbf16>
    %c0_16 = arith.constant 0 : index
    %c80 = arith.constant 80 : index
    %28 = vector.load %arg6[%c0_16, %c80] : memref<8x192xbf16, #tpu.memory_space<vmem>>, vector<8x16xbf16>
    %c0_17 = arith.constant 0 : index
    %c144 = arith.constant 144 : index
    %29 = vector.load %arg6[%c0_17, %c144] : memref<8x192xbf16, #tpu.memory_space<vmem>>, vector<8x16xbf16>
    %30 = vector.shape_cast %27 : vector<8x16xbf16> to vector<1x8x16xbf16>
    %31 = vector.shape_cast %28 : vector<8x16xbf16> to vector<1x8x16xbf16>
    %32 = vector.shape_cast %29 : vector<8x16xbf16> to vector<1x8x16xbf16>
    "tpu.trace_start"() <{level = 10 : i32, message = "bqd,bkd->bqk"}> : () -> ()
    %cst_18 = arith.constant dense<0.000000e+00> : vector<1x8x8xf32>
    %33 = tpu.matmul %30, %31, %cst_18 {dimension_numbers = #tpu.dot_dimension_numbers<[2], [2], [1], [1], [0, 0, 0, 1, 1, 1], [0], [0]>} : vector<1x8x16xbf16>, vector<1x8x16xbf16>, vector<1x8x8xf32> -> vector<1x8x8xf32>
    "tpu.trace_stop"() : () -> ()
    %cst_19 = arith.constant dense<0xFF800000> : vector<1x8xf32>
    %34 = vector.multi_reduction <maximumf>, %33, %cst_19 [2] : vector<1x8x8xf32> to vector<1x8xf32>
    %35 = vector.shape_cast %34 : vector<1x8xf32> to vector<1x8x1xf32>
    %36 = vector.broadcast %35 : vector<1x8x1xf32> to vector<1x8x8xf32>
    %37 = arith.subf %33, %36 : vector<1x8x8xf32>
    %38 = math.exp %37 : vector<1x8x8xf32>
    %cst_20 = arith.constant dense<0.000000e+00> : vector<1x8xf32>
    %39 = vector.multi_reduction <add>, %38, %cst_20 [2] : vector<1x8x8xf32> to vector<1x8xf32>
    %40 = vector.shape_cast %39 : vector<1x8xf32> to vector<1x8x1xf32>
    %41 = arith.truncf %38 : vector<1x8x8xf32> to vector<1x8x8xbf16>
    "tpu.trace_start"() <{level = 10 : i32, message = "bqk,bkd->bqd"}> : () -> ()
    %cst_21 = arith.constant dense<0.000000e+00> : vector<1x8x16xf32>
    %42 = tpu.matmul %41, %32, %cst_21 {dimension_numbers = #tpu.dot_dimension_numbers<[2], [1], [1], [2], [0, 0, 0, 1, 1, 2], [0], [0]>} : vector<1x8x8xbf16>, vector<1x8x16xbf16>, vector<1x8x16xf32> -> vector<1x8x16xf32>
    "tpu.trace_stop"() : () -> ()
    %43 = tpu.reciprocal %40 {approx = true} : vector<1x8x1xf32> -> vector<1x8x1xf32>
    %44 = vector.broadcast %43 : vector<1x8x1xf32> to vector<1x8x16xf32>
    %45 = arith.mulf %42, %44 : vector<1x8x16xf32>
    %46 = vector.shape_cast %45 : vector<1x8x16xf32> to vector<8x16xf32>
    %47 = arith.truncf %46 : vector<8x16xf32> to vector<8x16xbf16>
    %c0_22 = arith.constant 0 : index
    %c16_23 = arith.constant 16 : index
    %48 = vector.load %arg7[%c0_22, %c16_23] : memref<8x64xbf16, #tpu.memory_space<vmem>>, vector<8x16xbf16>
    tpu.vector_store %arg7[%c0_22, %c16_23], %47 {strides = array<i32>} : memref<8x64xbf16, #tpu.memory_space<vmem>>, vector<8x16xbf16>,
    %c0_24 = arith.constant 0 : index
    %c32 = arith.constant 32 : index
    %49 = vector.load %arg6[%c0_24, %c32] : memref<8x192xbf16, #tpu.memory_space<vmem>>, vector<8x16xbf16>
    %c0_25 = arith.constant 0 : index
    %c96 = arith.constant 96 : index
    %50 = vector.load %arg6[%c0_25, %c96] : memref<8x192xbf16, #tpu.memory_space<vmem>>, vector<8x16xbf16>
    %c0_26 = arith.constant 0 : index
    %c160 = arith.constant 160 : index
    %51 = vector.load %arg6[%c0_26, %c160] : memref<8x192xbf16, #tpu.memory_space<vmem>>, vector<8x16xbf16>
    %52 = vector.shape_cast %49 : vector<8x16xbf16> to vector<1x8x16xbf16>
    %53 = vector.shape_cast %50 : vector<8x16xbf16> to vector<1x8x16xbf16>
    %54 = vector.shape_cast %51 : vector<8x16xbf16> to vector<1x8x16xbf16>
    "tpu.trace_start"() <{level = 10 : i32, message = "bqd,bkd->bqk"}> : () -> ()
    %cst_27 = arith.constant dense<0.000000e+00> : vector<1x8x8xf32>
    %55 = tpu.matmul %52, %53, %cst_27 {dimension_numbers = #tpu.dot_dimension_numbers<[2], [2], [1], [1], [0, 0, 0, 1, 1, 1], [0], [0]>} : vector<1x8x16xbf16>, vector<1x8x16xbf16>, vector<1x8x8xf32> -> vector<1x8x8xf32>
    "tpu.trace_stop"() : () -> ()
    %cst_28 = arith.constant dense<0xFF800000> : vector<1x8xf32>
    %56 = vector.multi_reduction <maximumf>, %55, %cst_28 [2] : vector<1x8x8xf32> to vector<1x8xf32>
    %57 = vector.shape_cast %56 : vector<1x8xf32> to vector<1x8x1xf32>
    %58 = vector.broadcast %57 : vector<1x8x1xf32> to vector<1x8x8xf32>
    %59 = arith.subf %55, %58 : vector<1x8x8xf32>
    %60 = math.exp %59 : vector<1x8x8xf32>
    %cst_29 = arith.constant dense<0.000000e+00> : vector<1x8xf32>
    %61 = vector.multi_reduction <add>, %60, %cst_29 [2] : vector<1x8x8xf32> to vector<1x8xf32>
    %62 = vector.shape_cast %61 : vector<1x8xf32> to vector<1x8x1xf32>
    %63 = arith.truncf %60 : vector<1x8x8xf32> to vector<1x8x8xbf16>
    "tpu.trace_start"() <{level = 10 : i32, message = "bqk,bkd->bqd"}> : () -> ()
    %cst_30 = arith.constant dense<0.000000e+00> : vector<1x8x16xf32>
    %64 = tpu.matmul %63, %54, %cst_30 {dimension_numbers = #tpu.dot_dimension_numbers<[2], [1], [1], [2], [0, 0, 0, 1, 1, 2], [0], [0]>} : vector<1x8x8xbf16>, vector<1x8x16xbf16>, vector<1x8x16xf32> -> vector<1x8x16xf32>
    "tpu.trace_stop"() : () -> ()
    %65 = tpu.reciprocal %62 {approx = true} : vector<1x8x1xf32> -> vector<1x8x1xf32>
    %66 = vector.broadcast %65 : vector<1x8x1xf32> to vector<1x8x16xf32>
    %67 = arith.mulf %64, %66 : vector<1x8x16xf32>
    %68 = vector.shape_cast %67 : vector<1x8x16xf32> to vector<8x16xf32>
    %69 = arith.truncf %68 : vector<8x16xf32> to vector<8x16xbf16>
    %c0_31 = arith.constant 0 : index
    %c32_32 = arith.constant 32 : index
    %70 = vector.load %arg7[%c0_31, %c32_32] : memref<8x64xbf16, #tpu.memory_space<vmem>>, vector<8x16xbf16>
    tpu.vector_store %arg7[%c0_31, %c32_32], %69 {strides = array<i32>} : memref<8x64xbf16, #tpu.memory_space<vmem>>, vector<8x16xbf16>,
    %c0_33 = arith.constant 0 : index
    %c48 = arith.constant 48 : index
    %71 = vector.load %arg6[%c0_33, %c48] : memref<8x192xbf16, #tpu.memory_space<vmem>>, vector<8x16xbf16>
    %c0_34 = arith.constant 0 : index
    %c112 = arith.constant 112 : index
    %72 = vector.load %arg6[%c0_34, %c112] : memref<8x192xbf16, #tpu.memory_space<vmem>>, vector<8x16xbf16>
    %c0_35 = arith.constant 0 : index
    %c176 = arith.constant 176 : index
    %73 = vector.load %arg6[%c0_35, %c176] : memref<8x192xbf16, #tpu.memory_space<vmem>>, vector<8x16xbf16>
    %74 = vector.shape_cast %71 : vector<8x16xbf16> to vector<1x8x16xbf16>
    %75 = vector.shape_cast %72 : vector<8x16xbf16> to vector<1x8x16xbf16>
    %76 = vector.shape_cast %73 : vector<8x16xbf16> to vector<1x8x16xbf16>
    "tpu.trace_start"() <{level = 10 : i32, message = "bqd,bkd->bqk"}> : () -> ()
    %cst_36 = arith.constant dense<0.000000e+00> : vector<1x8x8xf32>
    %77 = tpu.matmul %74, %75, %cst_36 {dimension_numbers = #tpu.dot_dimension_numbers<[2], [2], [1], [1], [0, 0, 0, 1, 1, 1], [0], [0]>} : vector<1x8x16xbf16>, vector<1x8x16xbf16>, vector<1x8x8xf32> -> vector<1x8x8xf32>
    "tpu.trace_stop"() : () -> ()
    %cst_37 = arith.constant dense<0xFF800000> : vector<1x8xf32>
    %78 = vector.multi_reduction <maximumf>, %77, %cst_37 [2] : vector<1x8x8xf32> to vector<1x8xf32>
    %79 = vector.shape_cast %78 : vector<1x8xf32> to vector<1x8x1xf32>
    %80 = vector.broadcast %79 : vector<1x8x1xf32> to vector<1x8x8xf32>
    %81 = arith.subf %77, %80 : vector<1x8x8xf32>
    %82 = math.exp %81 : vector<1x8x8xf32>
    %cst_38 = arith.constant dense<0.000000e+00> : vector<1x8xf32>
    %83 = vector.multi_reduction <add>, %82, %cst_38 [2] : vector<1x8x8xf32> to vector<1x8xf32>
    %84 = vector.shape_cast %83 : vector<1x8xf32> to vector<1x8x1xf32>
    %85 = arith.truncf %82 : vector<1x8x8xf32> to vector<1x8x8xbf16>
    "tpu.trace_start"() <{level = 10 : i32, message = "bqk,bkd->bqd"}> : () -> ()
    %cst_39 = arith.constant dense<0.000000e+00> : vector<1x8x16xf32>
    %86 = tpu.matmul %85, %76, %cst_39 {dimension_numbers = #tpu.dot_dimension_numbers<[2], [1], [1], [2], [0, 0, 0, 1, 1, 2], [0], [0]>} : vector<1x8x8xbf16>, vector<1x8x16xbf16>, vector<1x8x16xf32> -> vector<1x8x16xf32>
    "tpu.trace_stop"() : () -> ()
    %87 = tpu.reciprocal %84 {approx = true} : vector<1x8x1xf32> -> vector<1x8x1xf32>
    %88 = vector.broadcast %87 : vector<1x8x1xf32> to vector<1x8x16xf32>
    %89 = arith.mulf %86, %88 : vector<1x8x16xf32>
    %90 = vector.shape_cast %89 : vector<1x8x16xf32> to vector<8x16xf32>
    %91 = arith.truncf %90 : vector<8x16xf32> to vector<8x16xbf16>
    %c0_40 = arith.constant 0 : index
    %c48_41 = arith.constant 48 : index
    %92 = vector.load %arg7[%c0_40, %c48_41] : memref<8x64xbf16, #tpu.memory_space<vmem>>, vector<8x16xbf16>
    tpu.vector_store %arg7[%c0_40, %c48_41], %91 {strides = array<i32>} : memref<8x64xbf16, #tpu.memory_space<vmem>>, vector<8x16xbf16>,
    %c0_42 = arith.constant 0 : index
    %c0_43 = arith.constant 0 : index
    %93 = vector.load %arg7[%c0_42, %c0_43] : memref<8x64xbf16, #tpu.memory_space<vmem>>, vector<8x64xbf16>
    %c0_44 = arith.constant 0 : index
    %c0_45 = arith.constant 0 : index
    %94 = vector.load %arg3[%c0_44, %c0_45] : memref<64x32xbf16, #tpu.memory_space<vmem>>, vector<64x32xbf16>
    %cst_46 = arith.constant dense<0.000000e+00> : vector<8x32xf32>
    %95 = tpu.matmul %93, %94, %cst_46 {dimension_numbers = #tpu.dot_dimension_numbers<[1], [0], [0], [1], [0, 0, 1, 1], [], []>} : vector<8x64xbf16>, vector<64x32xbf16>, vector<8x32xf32> -> vector<8x32xf32>
    %c0_47 = arith.constant 0 : index
    %c0_48 = arith.constant 0 : index
    %96 = vector.load %arg4[%c0_47, %c0_48] : memref<1x32xf32, #tpu.memory_space<vmem>>, vector<1x32xf32>
    %97 = vector.broadcast %96 : vector<1x32xf32> to vector<8x32xf32>
    %98 = arith.addf %95, %97 : vector<8x32xf32>
    %c0_49 = arith.constant 0 : index
    %c0_50 = arith.constant 0 : index
    %99 = vector.load %arg5[%c0_49, %c0_50] : memref<8x32xf32, #tpu.memory_space<vmem>>, vector<8x32xf32>
    tpu.vector_store %arg5[%c0_49, %c0_50], %98 {strides = array<i32>} : memref<8x32xf32, #tpu.memory_space<vmem>>, vector<8x32xf32>,
    return
  }
  func.func @transform_0(%arg0: i32) -> (i32, i32) {
    %c0_i32 = arith.constant 0 : i32
    %c0_i32_0 = arith.constant 0 : i32
    return %arg0, %c0_i32 : i32, i32
  }
  func.func @transform_1(%arg0: i32) -> (i32, i32) {
    %c0_i32 = arith.constant 0 : i32
    %c0_i32_0 = arith.constant 0 : i32
    %c0_i32_1 = arith.constant 0 : i32
    return %c0_i32, %c0_i32_0 : i32, i32
  }
  func.func @transform_2(%arg0: i32) -> (i32, i32) {
    %c0_i32 = arith.constant 0 : i32
    %c0_i32_0 = arith.constant 0 : i32
    %c0_i32_1 = arith.constant 0 : i32
    return %c0_i32, %c0_i32_0 : i32, i32
  }
  func.func @transform_3(%arg0: i32) -> (i32, i32) {
    %c0_i32 = arith.constant 0 : i32
    %c0_i32_0 = arith.constant 0 : i32
    %c0_i32_1 = arith.constant 0 : i32
    return %c0_i32, %c0_i32_0 : i32, i32
  }
  func.func @transform_4(%arg0: i32) -> (i32, i32) {
    %c0_i32 = arith.constant 0 : i32
    %c0_i32_0 = arith.constant 0 : i32
    return %arg0, %c0_i32 : i32, i32
  }
}

</mosaic_0001>

<bundles_post_ra>
// kernel: tpu_custom_call.1
= control target key start
LH: loop header
LB: loop body
LE: loop exit
PB: predicated region body
PF: predicated region fallthrough
CT: control target
= control target key end

     0   :  { %9 = vsyncpa [#allocation5], 0  ;;  %s1434_s0 = inlined_call_operand.vmem [shape: bf16[16,32], index: 0, kind: input, shape index: {}]   ;;  %s1435_s1 = inlined_call_operand.vmem [shape: bf16[32,192], index: 1, kind: input, shape index: {}]   ;;  %s1436_s2 = inlined_call_operand.vmem [shape: bf16[64,32], index: 2, kind: input, shape index: {}]   ;;  %s1437_s3 = inlined_call_operand.vmem [shape: f32[1,32], index: 3, kind: input, shape index: {}]   ;;  %s1438_s4 = inlined_call_operand.hbm [shape: f32[16,32], index: 4, kind: output, shape index: {}]  }
   0x1   :  { %11 = vsyncpa [#allocation5 + $0x1], 0  ;;  %s1238_s15 = smov 0   ;;  %s1240_s16 = smov 0  }
   0x2   :  { %s1242_s17 = smov 0   ;;  %s1244_s18 = smov 0  }
   0x3 LB: > { %s1259_s19 = sadd.s32 4294967295, %s1200_s18   ;;  %s931_s20 = sadd.s32 4294967294, %s1200_s18   ;;  %s1200_s18 = sphi %s1244_s18, %s1444_s18   ;;  %s1196_s17 = sphi %s1242_s17, %s1443_s17   ;;  %s1192_s16 = sphi %s1240_s16, %s1442_s16   ;;  %s1188_s15 = sphi %s1238_s15, %s1441_s15  }
   0x4   : > { %s1263_s21 = sadd.s32 1, %s1200_s18   ;;  %s113_s22 = sadd.s32 1, %s1196_s17 }
   0x5   : > { %s110_s23 = ssub.s32 %s1200_s18, %s1263_s21  ;;  %p123_p0 = scmp.ne.s32.totalorder %s1196_s17, %s1192_s16 }
   0x6   : > { %p111_p1 = scmp.eq.s32.totalorder %s110_s23, 0  ;;  %p124_p2 = scmp.eq.s32.totalorder %s1259_s19, 1 }
   0x7   : > { %p129_p3 = scmp.ne.s32.totalorder %s1192_s16, %s1188_s15  ;;  %p130_p4 = scmp.eq.s32.totalorder %s931_s20, 1 }
   0x8   : > { %s1274_s24 = scalar_select %p111_p1, %s1196_s17, %s113_s22  }
   0x9   : > { %p1276_p5 = por %p124_p2, %p123_p0  ;;  %p1280_p6 = por %p130_p4, %p129_p3 }
   0xa   : > { %p934_p7 = scmp.ge.s32.totalorder %s1200_s18, 1  ;;  %p164_p8 = scmp.lt.s32.totalorder %s1200_s18, 3 }
   0xc   : > { %p165_p9 = pnand %p934_p7, %p164_p8 }
   0xd   : > { %v1105_v0 = vld [vmem:[%s1435_s1 + $0x4] ss:$8 sps:$4 sm:$0xff] (!%p165_p9)   ;;  %p189_p10 = scmp.lt.s32.totalorder (!%p165_p9), %s1259_s19, 1  ;;  %v1107_v1 = vld [vmem:[%s1435_s1] ss:$8 sps:$4 sm:$0xff] (!%p165_p9)   ;;  %v1202_v2 = vmov (!%p165_p9), 0  }
   0xe   : > { %168 = sbr.rel (%p165_p9) target bundleno = 1367 (0x557), region = 36  ;;  %255 = vmatprep.mubr.bf16.mxu0 (!%p165_p9), %v1202_v2  ;;  %223 = vmatprep.subr.bf16.mxu0 (!%p165_p9), %v1105_v0  ;;  %v1108_v3 = vld [vmem:[%s1435_s1 + $0x14] ss:$8 sps:$4 sm:$0xff] (!%p165_p9)   ;;  %v1110_v4 = vld [vmem:[%s1435_s1 + $0x10] ss:$8 sps:$4 sm:$0xff] (!%p165_p9)   ;;  %vm219_vm0 = vcmask (!%p165_p9), 261120  }
   0xf   : > { %224 = vmatpush1.bf16.msra.mxu0 (!%p165_p9), %v1107_v1  ;;  %v1203_v6 = vmov (!%p165_p9), 0.0   ;;  %vm272_vm1 = vcmask (!%p165_p9), 1043456   ;;  %vm273_vm2 = vcmask (!%p165_p9), 523268   ;;  %vm1204_vm4 = vmmov (!%p165_p9), 0   ;;  %s1205_s14 = smov (!%p165_p9), 112   ;;  %s1206_s20 = smov (!%p165_p9), 64  }
  0x10   : > { %225 = vmatprep.subr.bf16.mxu0 (!%p165_p9), %v1108_v3  ;;  %996 = vmatprep.subr.bf16.mxu1 (!%p165_p9), %v1203_v6  ;;  %vm274_vm3 = vmor (!%p165_p9), %vm273_vm2, %vm272_vm1  ;;  %s1207_s22 = smov (!%p165_p9), 32   ;;  %s1208_s23 = smov (!%p165_p9), 48   ;;  %vm283_vm5 = vcmask (!%p165_p9), 130048   ;;  %vm330_vm6 = vcmask (!%p165_p9), 64512   ;;  %vm390_vm7 = vcmask (!%p165_p9), 125952   ;;  %vm517_vm8 = vcmask (!%p165_p9), 257152  }
  0x11   : > { %998 = vmatprep.mubr.msk.bf16.mxu1 (!%p165_p9), %vm1204_vm4, %v1203_v6  ;;  %s1209_s27 = smov (!%p165_p9), 16   ;;  %s1210_s28 = smov (!%p165_p9), 96   ;;  %vm644_vm9 = vcmask (!%p165_p9), 388352   ;;  %vm771_vm10 = vcmask (!%p165_p9), 519552   ;;  %vm813_vm11 = vcmask (!%p165_p9), 523264  }
  0x12   : > { %s1211_s29 = smov (!%p165_p9), 80   ;;  %s186_s12 = sand.u32 (!%p165_p9), 1, %s1192_s16  }
  0x13   : > { %226 = vmatpush1.bf16.msra.mxu0 (!%p165_p9), %v1110_v4  ;;  %s1212_s6 = smov (!%p165_p9), [#allocation4]  }
  0x14   : > { %1002 = vmatprep.subr.bf16.mxu0 (!%p165_p9), %v1203_v6  ;;  %s1142_s7 = sshll.u32 (!%p165_p9), %s1212_s6, 4  ;;  %s1143_s7 = int_to_ptr.vmem [resolvable:$false] %s1142_s7 }
  0x15   : > { %s190_s9 = scalar_select %p189_p10, %s1259_s19, 1 }
  0x16   : > { %s1144_s8 = scalar_lea.vmem %s1143_s7, 256 }
  0x17   : > { %s936_s10 = sshll.u32 %s190_s9, 2 }
  0x18   : > { %s192_s13 = scalar_lea.vmem %s1434_s0, %s936_s10 }
  0x19   : > { %v194_v5 = vld [vmem:[%s192_s13] sm:$0xf]  ;;  %s935_s13 = sshll.u32 %s186_s12, 3 }
  0x1a   : > { %941 = vmatmul.mubr.msk.bf16.vlgmr.msra.gmra.mrb[0].mxu0 %vm219_vm0, %v194_v5 }
  0x1b   : > { %1004 = vmatprep.mubr.msk.bf16.mxu0 %vm1204_vm4, %v1203_v6 }
  0xed   : > { %v257_v7 = vpop.f32.mrb[0].mxu0 }
  0xee   : > { %v259_v8 = vpop.f32.mrb[1].mxu0 }
  0xef   : > { %v971_v9 = vpack.c.bf16 %v259_v8, %v257_v7  ;;  %v261_v10 = vpop.f32.mrb[2].mxu0 }
  0xf0   : > { %v262_v11 = vpop.f32.mrb[3].mxu0 }
  0xf1   : > { %275 = vst.msk [vmem:[#allocation2] sm:$0xff] %vm274_vm3, %v971_v9 }
  0xf8   : > { %v277_v12 = vld [vmem:[#allocation2 + $0x4] sm:$0xf]  ;;  %v1111_v13 = vld [vmem:[#allocation2] ss:$0 sps:$4 sm:$0xff]  }
  0xf9   : > { %v345_v14 = vsel %vm272_vm1, %v277_v12, 0  ;;  %v276_v15 = vld [vmem:[#allocation2] sm:$0xf]  ;;  %397 = vrot.lane.b32.xlu1 %v1111_v13, %s1205_s14  ;;  %v1115_v43 = vld [vmem:[#allocation2 + $0x4] ss:$0 sps:$4 sm:$0xff]  }
  0xfa   : > { %1003 = vmatpush3.bf16.msra.mxu0 %v345_v14  ;;  %v943_v16 = vcombine.low %v276_v15, %v276_v15  ;;  %v1113_v17 = vld [vmem:[#allocation2] ss:$0 sps:$4 sm:$0xff]   ;;  %v1116_v50 = vld [vmem:[#allocation2 + $0x4] ss:$0 sps:$4 sm:$0xff]  }
  0xfb   : > { %1014 = vmatprep.subr.bf16.mxu0 %v1203_v6  ;;  %v1114_v18 = vld [vmem:[#allocation2] ss:$0 sps:$4 sm:$0xff]   ;;  %v1117_v52 = vld [vmem:[#allocation2 + $0x4] ss:$0 sps:$4 sm:$0xff]  }
  0xfc   : > { %281 = vrot.lane.b32.xlu0 %v943_v16, %s1206_s20 }
  0xfd   : > { %526 = vrot.lane.b32.xlu1 %v1113_v17, %s1207_s22 }
 0x100   : > { %399 = vrot.lane.b32.xlu0 %v1111_v13, %s1208_s23 }
 0x101   : > { %653 = vrot.lane.b32.xlu1 %v1114_v18, %s1209_s27 }
 0x104   : > { %524 = vrot.lane.b32.xlu0 %v1113_v17, %s1210_s28 }
 0x108   : > { %651 = vrot.lane.b32.xlu0 %v1114_v18, %s1211_s29 }
 0x16b   : > { %v398_v22 = vpop.permute.xlu1 %397 }
 0x16e   : > { %v282_v19 = vpop.permute.xlu0 %281 }
 0x16f   : > { %v288_v20 = vsel %vm283_vm5, %v282_v19, 0  ;;  %v527_v24 = vpop.permute.xlu1 %526 }
 0x170   : > { %997 = vmatpush3.bf16.xpose.msra.mxu1 %v288_v20  ;;  %v532_v25 = vsel %vm283_vm5, %v527_v24, 0 }
 0x171   : > { %1008 = vmatprep.subr.bf16.mxu1 %v1203_v6 }
 0x172   : > { %v400_v21 = vpop.permute.xlu0 %399 }
 0x173   : > { %v405_v23 = vsel %vm283_vm5, %v400_v21, 0  ;;  %v654_v26 = vpop.permute.xlu1 %653 }
 0x174   : > { %v659_v28 = vsel %vm283_vm5, %v654_v26, 0 }
 0x176   : > { %v525_v27 = vpop.permute.xlu0 %524 }
 0x177   : > { %999 = vmatmul.mubr.msk.bf16.vlgmr.msra.gmra.mrb[0].mxu1 %vm283_vm5, %v276_v15 }
 0x178   : > { %1009 = vmatpush3.bf16.xpose.msra.mxu1 %v405_v23  ;;  %1010 = vmatprep.mubr.msk.bf16.mxu1 %vm1204_vm4, %v1203_v6 }
 0x179   : > { %1020 = vmatprep.subr.bf16.mxu1 %v1203_v6 }
 0x17a   : > { %v652_v29 = vpop.permute.xlu0 %651 }
 0x17f   : > { %1011 = vmatmul.mubr.msk.bf16.vlgmr.msra.gmra.mrb[4].mxu1 %vm283_vm5, %v398_v22 }
 0x180   : > { %1021 = vmatpush3.bf16.xpose.msra.mxu1 %v532_v25  ;;  %1022 = vmatprep.mubr.msk.bf16.mxu1 %vm1204_vm4, %v1203_v6 }
 0x181   : > { %1032 = vmatprep.subr.bf16.mxu1 %v1203_v6 }
 0x187   : > { %1023 = vmatmul.mubr.msk.bf16.vlgmr.msra.gmra.mrb[8].mxu1 %vm283_vm5, %v525_v27 }
 0x188   : > { %1033 = vmatpush3.bf16.xpose.msra.mxu1 %v659_v28  ;;  %1034 = vmatprep.mubr.msk.bf16.mxu1 %vm1204_vm4, %v1203_v6 }
 0x189   : > { %1044 = vmatprep.subr.bf16.mxu1 %v1203_v6 }
 0x18f   : > { %1035 = vmatmul.mubr.msk.bf16.vlgmr.msra.gmra.mrb[12].mxu1 %vm283_vm5, %v652_v29 }
 0x190   : > { %1052 = vmatprep.mubr.msk.bf16.mxu1 %vm1204_vm4, %v1203_v6 }
 0x24a   : > { %v324_v30 = vpop.f32.mrb[0].mxu1 }
 0x24b   : > { %v1000_v31 = vpop.f32.mrb[1].mxu1  ;;  %v331_v32 = vsel %vm330_vm6, %v324_v30, -inf }
 0x24c   : > { %332 = vmax.xlane.f32.xlu1 %v331_v32  ;;  %v327_v33 = vpop.f32.mrb[2].mxu1 }
 0x24d   : > { %v1001_v34 = vpop.f32.mrb[3].mxu1  ;;  %v1118_v33 = vld [vmem:[%s1436_s2] sm:$0xff]  }
 0x24e   : > { %1045 = vmatpush3.bf16.msra.mxu1 %v1118_v33 }
 0x24f   : > { %1046 = vmatprep.subr.bf16.mxu1 %v1203_v6 }
 0x252   : > { %v441_v35 = vpop.f32.mrb[4].mxu1 }
 0x253   : > { %v1012_v36 = vpop.f32.mrb[5].mxu1  ;;  %v447_v37 = vsel %vm330_vm6, %v441_v35, -inf }
 0x254   : > { %448 = vmax.xlane.f32.xlu0 %v447_v37  ;;  %v444_v38 = vpop.f32.mrb[6].mxu1  ;;  %v1119_v37 = vld [vmem:[%s1436_s2 + $0x8] sm:$0xff]  }
 0x255   : > { %v1013_v39 = vpop.f32.mrb[7].mxu1  ;;  %1047 = vmatpush3.bf16.msra.mxu1 %v1119_v37 }
 0x256   : > { %1048 = vmatprep.subr.bf16.mxu1 %v1203_v6 }
 0x25a   : > { %v568_v40 = vpop.f32.mrb[8].mxu1 }
 0x25b   : > { %v1024_v41 = vpop.f32.mrb[9].mxu1  ;;  %v574_v42 = vsel %vm330_vm6, %v568_v40, -inf }
 0x25c   : > { %575 = vmax.xlane.f32.xlu0 %v574_v42  ;;  %v571_v44 = vpop.f32.mrb[10].mxu1 }
 0x25d   : > { %587 = vrot.lane.b32.xlu1 %v1115_v43, %s1210_s28  ;;  %v1025_v45 = vpop.f32.mrb[11].mxu1 }
 0x262   : > { %v695_v46 = vpop.f32.mrb[12].mxu1 }
 0x263   : > { %v1036_v47 = vpop.f32.mrb[13].mxu1  ;;  %v701_v51 = vsel %vm330_vm6, %v695_v46, -inf }
 0x264   : > { %v698_v48 = vpop.f32.mrb[14].mxu1  ;;  %v1120_v47 = vld [vmem:[%s1436_s2 + $0x10] sm:$0xff]  }
 0x265   : > { %v1037_v49 = vpop.f32.mrb[15].mxu1  ;;  %1049 = vmatpush3.bf16.msra.mxu1 %v1120_v47  ;;  %v1121_v48 = vld [vmem:[%s1436_s2 + $0x18] sm:$0xff]  }
 0x266   : > { %1050 = vmatprep.subr.bf16.mxu1 %v1203_v6 }
 0x269   : > { %1051 = vmatpush3.bf16.msra.mxu1 %v1121_v48 }
 0x272   : > { %460 = vrot.lane.b32.xlu0 %v1116_v50, %s1205_s14 }
 0x281   : > { %702 = vmax.xlane.f32.xlu1 %v701_v51 }
 0x292   : > { %714 = vrot.lane.b32.xlu1 %v1117_v52, %s1211_s29 }
 0x2d9   : > { %v333_v53 = vpop.xlane.xlu1 %332 }
 0x2da   : > { %v334_v54 = vsub.f32 %v324_v30, %v333_v53 }
 0x2dc   : > { %v335_v55 = vmul.f32 1.442695, %v334_v54 }
 0x2dd   : > { %v588_v3 = vpop.permute.xlu1 %587 }
 0x2de   : > { %1122 = vpow2.f32 %v335_v55  ;;  %v593_v7 = vsel %vm272_vm1, %v588_v3, 0 }
 0x2e1   : > { %v449_v56 = vpop.xlane.xlu0 %448 }
 0x2e2   : > { %v450_v57 = vsub.f32 %v441_v35, %v449_v56 }
 0x2e4   : > { %v451_v58 = vmul.f32 1.442695, %v450_v57 }
 0x2e6   : > { %1124 = vpow2.f32 %v451_v58 }
 0x2e8   : > { %v1123_v59 = vpop.eup %1122 }
 0x2e9   : > { %v576_v60 = vpop.xlane.xlu0 %575  ;;  %v340_v61 = vpack.c.bf16 %v1123_v59, %v1123_v59  ;;  %v337_v19 = vsel %vm330_vm6, %v1123_v59, 0.0  ;;  %v961_v59 = vld [vmem:[%s1437_s3] ss:$0 sm:$0xff] }
 0x2ea   : > { %v577_v62 = vsub.f32 %v568_v40, %v576_v60 }
 0x2eb   : > { %1005 = vmatmul.mubr.msk.bf16.vlgmr.msra.gmra.mrb[4].mxu0 %vm330_vm6, %v340_v61 }
 0x2ec   : > { %v578_v63 = vmul.f32 1.442695, %v577_v62  ;;  %1016 = vmatprep.mubr.msk.bf16.mxu0 %vm1204_vm4, %v1203_v6 }
 0x2ed   : > { %v461_v0 = vpop.permute.xlu0 %460 }
 0x2ee   : > { %1126 = vpow2.f32 %v578_v63  ;;  %v466_v1 = vsel %vm272_vm1, %v461_v0, 0 }
 0x2ef   : > { %1015 = vmatpush3.bf16.msra.mxu0 %v466_v1 }
 0x2f0   : > { %v1125_v2 = vpop.eup %1124  ;;  %1026 = vmatprep.subr.bf16.mxu0 %v1203_v6 }
 0x2f1   : > { %v453_v4 = vsel %vm330_vm6, %v1125_v2, 0.0  ;;  %v456_v5 = vpack.c.bf16 %v1125_v2, %v1125_v2 }
 0x2f2   : > { %454 = vadd.xlane.f32.xlu0 %v453_v4 }
 0x2f3   : > { %1017 = vmatmul.mubr.msk.bf16.vlgmr.msra.gmra.mrb[8].mxu0 %vm330_vm6, %v456_v5 }
 0x2f4   : > { %1027 = vmatpush3.bf16.msra.mxu0 %v593_v7  ;;  %1028 = vmatprep.mubr.msk.bf16.mxu0 %vm1204_vm4, %v1203_v6 }
 0x2f5   : > { %1038 = vmatprep.subr.bf16.mxu0 %v1203_v6 }
 0x2f8   : > { %v1127_v8 = vpop.eup %1126 }
 0x2f9   : > { %v580_v9 = vsel %vm330_vm6, %v1127_v8, 0.0  ;;  %v583_v10 = vpack.c.bf16 %v1127_v8, %v1127_v8 }
 0x2fa   : > { %581 = vadd.xlane.f32.xlu1 %v580_v9 }
 0x2fb   : > { %1029 = vmatmul.mubr.msk.bf16.vlgmr.msra.gmra.mrb[12].mxu0 %vm330_vm6, %v583_v10 }
 0x2fc   : > { %1040 = vmatprep.mubr.msk.bf16.mxu0 %vm1204_vm4, %v1203_v6 }
 0x30e   : > { %v703_v11 = vpop.xlane.xlu1 %702 }
 0x30f   : > { %v704_v12 = vsub.f32 %v695_v46, %v703_v11 }
 0x311   : > { %v705_v13 = vmul.f32 1.442695, %v704_v12 }
 0x312   : > { %v715_v14 = vpop.permute.xlu1 %714 }
 0x313   : > { %1128 = vpow2.f32 %v705_v13  ;;  %v720_v15 = vsel %vm272_vm1, %v715_v14, 0 }
 0x314   : > { %1039 = vmatpush3.bf16.msra.mxu0 %v720_v15 }
 0x31d   : > { %v1129_v16 = vpop.eup %1128 }
 0x31e   : > { %v707_v17 = vsel %vm330_vm6, %v1129_v16, 0.0  ;;  %v710_v18 = vpack.c.bf16 %v1129_v16, %v1129_v16 }
 0x31f   : > { %708 = vadd.xlane.f32.xlu0 %v707_v17 }
 0x320   : > { %1041 = vmatmul.mubr.msk.bf16.vlgmr.msra.gmra.mrb[16].mxu0 %vm330_vm6, %v710_v18 }
 0x323   : > { %338 = vadd.xlane.f32.xlu0 %v337_v19 }
 0x37f   : > { %v455_v20 = vpop.xlane.xlu0 %454 }
 0x387   : > { %v582_v28 = vpop.xlane.xlu1 %581 }
 0x3ac   : > { %v709_v21 = vpop.xlane.xlu0 %708 }
 0x3b0   : > { %v339_v22 = vpop.xlane.xlu0 %338 }
 0x3b1   : > { %1130 = vrcp.f32 %v339_v22 }
 0x3b2   : > { %1132 = vrcp.f32 %v455_v20 }
 0x3b3   : > { %1134 = vrcp.f32 %v582_v28 }
 0x3b4   : > { %1136 = vrcp.f32 %v709_v21 }
 0x3bb   : > { %v1131_v23 = vpop.eup %1130 }
 0x3bc   : > { %v1133_v31 = vpop.eup %1132 }
 0x3bd   : > { %v1135_v40 = vpop.eup %1134 }
 0x3be   : > { %v381_v24 = vpop.f32.mrb[4].mxu0  ;;  %v1137_v49 = vpop.eup %1136 }
 0x3bf   : > { %v388_v25 = vmul.f32 %v1131_v23, %v381_v24  ;;  %v1006_v26 = vpop.f32.mrb[5].mxu0 }
 0x3c0   : > { %v384_v27 = vpop.f32.mrb[6].mxu0 }
 0x3c1   : > { %v389_v29 = vpack.c.bf16 %v388_v25, %v388_v25  ;;  %v1007_v30 = vpop.f32.mrb[7].mxu0 }
 0x3c3   : > { %391 = vst.msk [vmem:[#allocation3] sm:$0xf] %vm390_vm7, %v389_v29 }
 0x3c6   : > { %v502_v32 = vpop.f32.mrb[8].mxu0 }
 0x3c7   : > { %v509_v34 = vmul.f32 %v1133_v31, %v502_v32  ;;  %v1018_v35 = vpop.f32.mrb[9].mxu0 }
 0x3c8   : > { %v505_v36 = vpop.f32.mrb[10].mxu0 }
 0x3c9   : > { %v972_v38 = vpack.c.bf16 %v509_v34, %v509_v34  ;;  %v1019_v39 = vpop.f32.mrb[11].mxu0 }
 0x3cb   : > { %514 = vrot.lane.b32.xlu1 %v972_v38, %s1209_s27 }
 0x3ce   : > { %v629_v41 = vpop.f32.mrb[12].mxu0 }
 0x3cf   : > { %v636_v42 = vmul.f32 %v1135_v40, %v629_v41  ;;  %v1030_v43 = vpop.f32.mrb[13].mxu0 }
 0x3d0   : > { %v632_v44 = vpop.f32.mrb[14].mxu0 }
 0x3d1   : > { %v973_v45 = vpack.c.bf16 %v636_v42, %v636_v42  ;;  %v1031_v46 = vpop.f32.mrb[15].mxu0 }
 0x3d3   : > { %641 = vrot.lane.b32.xlu0 %v973_v45, %s1207_s22  ;;  %s968_s22 = sshll.u32 %s1259_s19, 7  ;;  %s859_s19 = scalar_lea.sflag [#allocation5], %s186_s12 }
 0x3d4   : > { %s1391_s30 = scalar_lea.hbm %s1438_s4, %s968_s22 }
 0x3f3   : > { %v756_v50 = vpop.f32.mrb[16].mxu0 }
 0x3f4   : > { %v763_v51 = vmul.f32 %v1137_v49, %v756_v50  ;;  %v1042_v52 = vpop.f32.mrb[17].mxu0 }
 0x3f5   : > { %v759_v53 = vpop.f32.mrb[18].mxu0 }
 0x3f6   : > { %v974_v54 = vpack.c.bf16 %v763_v51, %v763_v51  ;;  %v1043_v55 = vpop.f32.mrb[19].mxu0 }
 0x3f8   : > { %768 = vrot.lane.b32.xlu1 %v974_v54, %s1208_s23  ;;  %s188_s23 = scalar_lea.vmem [#allocation4], %s935_s13 }
 0x3f9   : > { %s872_s27 = sshll.u32 %s188_s23, 4  ;;  %s1393_s27 = int_to_ptr.vmem [resolvable:$true] %s872_s27 }
 0x3fa   : > { %s1138_s5 = scalar_lea.vmem %s1393_s27, 128  ;;  %p1145_p0 = scmp.lt.s32.totalorder %s1393_s27, %s1143_s7 }
 0x3fb   : > { %p1139_p11 = scmp.ne.s32.totalorder %s1393_s27, %s1138_s5  ;;  %p1146_p1 = scmp.lt.s32.totalorder %s1144_s8, %s1138_s5 }
 0x3fd   : > { %p1140_p12 = pnand %p1139_p11, %p1276_p5  ;;  %p1147_p2 = por %p1146_p1, %p1145_p0 }
 0x3ff   : > { %p1141_p13 = pneg %p1140_p12 }
 0x401   : > { %p1148_p3 = pnand %p1147_p2, %p1141_p13 }
 0x43d   : > { %v515_v56 = vpop.permute.xlu1 %514 }
 0x43e   : > { %518 = vst.msk [vmem:[#allocation3] sm:$0xf] %vm517_vm8, %v515_v56 }
 0x445   : > { %v642_v57 = vpop.permute.xlu0 %641 }
 0x446   : > { %645 = vst.msk [vmem:[#allocation3] sm:$0xf] %vm644_vm9, %v642_v57 }
 0x46a   : > { %v769_v6 = vpop.permute.xlu1 %768 }
 0x46b   : > { %772 = vst.msk [vmem:[#allocation3] sm:$0xf] %vm771_vm10, %v769_v6 }
 0x472   : > { %v773_v58 = vld [vmem:[#allocation3] sm:$0xf] }
 0x473   : > { %1053 = vmatmul.mubr.msk.bf16.vlgmr.msra.gmra.mrb[16].mxu1 %vm813_vm11, %v773_v58 }
 0x546   : > { %v851_v60 = vpop.f32.mrb[16].mxu1 }
 0x547   : > { %v852_v61 = vadd.f32 %v961_v59, %v851_v60  ;;  %v1054_v62 = vpop.f32.mrb[17].mxu1 }
 0x548   : > { %v854_v63 = vpop.f32.mrb[18].mxu1 }
 0x549   : > { %v1055_v0 = vpop.f32.mrb[19].mxu1  ;;  %857 = vst.msk [vmem:[%s188_s23] sm:$0xff] %vm219_vm0, %v852_v61 }
 0x54a   : > { %1151 = shalt.err (!%p1148_p3)
}
 0x54b   : > { %s1152_s9 = scalar_lea.hbm %s1391_s30, 128  ;;  %s1156_s12 = scalar_lea.hbm %s1438_s4, 256 }
 0x54c   : > { %p1153_p4 = scmp.ne.s32.totalorder %s1391_s30, %s1152_s9  ;;  %p1157_p9 = scmp.lt.u32.totalorder %s1391_s30, %s1438_s4 }
 0x54d   : > { %p1158_p10 = scmp.lt.u32.totalorder %s1156_s12, %s1152_s9  ;;  %p1160_p12 = scmp.lt.u32.totalorder %s1152_s9, %s1391_s30 }
 0x54e   : > { %p1154_p7 = pnand %p1153_p4, %p1276_p5 }
 0x54f   : > { %p1159_p11 = por %p1158_p10, %p1157_p9 }
 0x550   : > { %p1155_p8 = pneg %p1154_p7 }
 0x551   : > { %p1161_p13 = por %p1160_p12, %p1159_p11 }
 0x553   : > { %p1162_p0 = pnand %p1161_p13, %p1155_p8 }
 0x555   : > { %1165 = shalt.err (!%p1162_p0)
}
 0x556   : > { %1056 = dma.vmem_to_hbm [thread:$0]  (%p1276_p5), %s1393_s27, 128, %s1391_s30, %s859_s19  }
 0x557 PF: > { %p1062_p1 = scmp.ge.s32.totalorder %s1200_s18, 2  ;;  %s884_s20 = sand.u32 1, %s1188_s15  }
 0x558   : > { %s885_s22 = scalar_lea.sflag [#allocation5], %s884_s20 }
 0x559   : > { %p1059_p2 = pnand %p1062_p1, %p1280_p6 }
 0x55b   : > { %1183 = dma.done.wait (!%p1059_p2), %s885_s22, 128  }
 0x55c   : > { %1185 = vsyncadd (!%p1059_p2), %s885_s22, 4294967168  ;;  %p14_p3 = scmp.ge.s32.totalorder %s1263_s21, 4   ;;  %s1441_s15 = smov %s1192_s16 }
 0x55d   : > { %s1442_s16 = smov %s1196_s17  ;;  %s1443_s17 = smov %s1274_s24 }
 0x55e   : > { %s1444_s18 = smov %s1263_s21  ;;  %16 = sbr.rel (!%p14_p3) target bundleno = 3 (0x3), region = 71 }
 0x565   :  { %890 = vsyncpa [#allocation5], 1 }
 0x566   :  { %892 = vsyncpa [#allocation5 + $0x1], 1 }

</bundles_post_ra>
